<compile_context>
chip_gen: v7x
topology: tpu7x:2x2x1
jax: 0.10.0
libtpu: 0.0.40
codegen_flags: <defaults>
</compile_context>

<pallas_src>
import functools

import jax
import jax.numpy as jnp
from jax import lax
from jax.experimental import pallas as pl
from jax.experimental.pallas import tpu as pltpu

_EPS = 1e-6  # torch.nn.functional.pairwise_distance default eps (added to diff)


def _round_up(x, m):
    return ((x + m - 1) // m) * m


def _vmem_capacity_bytes():
    """Per-core VMEM capacity; conservative fallback (v7x = 64 MiB)."""
    try:
        return int(pltpu.get_tpu_info().vmem_capacity_bytes)
    except Exception:
        return 64 * 1024 * 1024


def _contrastive_loss_kernel(o1_ref, o2_ref, label_ref, out_ref, acc_ref, *,
                             margin, inv_c, tb, total_b, steps_per_split,
                             needs_mask):
    s = pl.program_id(0)   # "parallel" split axis (megacore shard on v7x)
    j = pl.program_id(1)   # "arbitrary" accumulation axis

    @pl.when(j == 0)
    def _():
        acc_ref[...] = jnp.zeros_like(acc_ref)

    # Cast to f32 in-kernel (inputs stream through VMEM in their native dtype).
    o1 = o1_ref[...].astype(jnp.float32)                          # (tb, C)
    o2 = o2_ref[...].astype(jnp.float32)                          # (tb, C)
    diff = (o1 - o2) + _EPS                                       # (tb, C)

    # Row reduce over C on the MXU (constant ones vector), keeping the XLU idle.
    ones_c = jnp.ones((o1.shape[1], 1), jnp.float32)
    sq = jnp.dot(diff * diff, ones_c,
                 preferred_element_type=jnp.float32)              # (tb, 1)

    dist = jnp.sqrt(sq) * inv_c                                   # (tb, 1) EUP
    lbl = label_ref[...].astype(jnp.float32)                      # (tb, 1)
    hinge = jnp.maximum(margin - dist, 0.0)
    per_sample = (1.0 - lbl) * (dist * dist) + lbl * (hinge * hinge)

    row_start = (s * steps_per_split + j) * tb

    if needs_mask:
        # Only partial / padded tiles pay for the mask; full tiles skip it.
        @pl.when(row_start + tb > total_b)
        def _():
            rows = lax.broadcasted_iota(jnp.int32, (tb, 1), 0) + row_start
            masked = jnp.where(rows < total_b, per_sample, 0.0)
            acc_ref[...] += jnp.sum(masked, axis=(0, 1), keepdims=True)

        @pl.when(row_start + tb <= total_b)
        def _():
            acc_ref[...] += jnp.sum(per_sample, axis=(0, 1), keepdims=True)
    else:
        acc_ref[...] += jnp.sum(per_sample, axis=(0, 1), keepdims=True)

    @pl.when(j == steps_per_split - 1)
    def _():
        out_ref[0] = acc_ref[...]


def contrastive_loss(output1, output2, label, margin=2.0, block_b=None):
    """Pallas TPU contrastive loss. output1/output2: (B, C); label: (B,)."""
    B, C = output1.shape
    itemsize = output1.dtype.itemsize
    # Sublane multiple per dtype packing (f32: 8, bf16: 16, int8/fp8: 32).
    sub = {4: 8, 2: 16, 1: 32}.get(itemsize, 8)

    vmem_cap = _vmem_capacity_bytes()

    if block_b is None:
        # ~40% of this generation's VMEM for the 2 inputs x 2 pipeline buffers,
        # per-input block capped at 4 MiB (DMA-efficiency sweet spot), and a
        # 4096-row cap to bound lane-sparse (tb,1) temporaries.
        budget = (2 * vmem_cap) // 5
        cand = min(4096,
                   budget // max(1, 4 * C * itemsize),
                   (4 * 1024 * 1024) // max(1, C * itemsize))
        cand = max(sub, (cand // sub) * sub)
    else:
        cand = _round_up(max(1, int(block_b)), sub)
        # Validate user tile against the generation's VMEM (clamp, don't fail).
        max_safe = ((3 * vmem_cap) // 5) // max(1, 4 * C * itemsize)
        cand = min(cand, max(sub, (max_safe // sub) * sub))

    # A block spanning the whole batch dim is always layout-legal (full-dim rule).
    tb = B if cand >= B else cand

    num_tiles = (B + tb - 1) // tb
    num_splits = 2 if num_tiles >= 2 else 1           # megacore shard on v7x
    steps_per_split = (num_tiles + num_splits - 1) // num_splits
    needs_mask = (B % tb != 0) or (num_splits * steps_per_split != num_tiles)

    label2d = label.reshape(B, 1).astype(jnp.float32)

    def feat_map(si, ji):
        # Clamp padded split steps onto the last real tile; the kernel masks
        # their contribution to zero via row_start >= B.
        t = jnp.minimum(si * steps_per_split + ji, num_tiles - 1)
        return (t, 0)

    kernel = functools.partial(
        _contrastive_loss_kernel,
        margin=float(margin),
        inv_c=1.0 / float(C),
        tb=tb,
        total_b=B,
        steps_per_split=steps_per_split,
        needs_mask=needs_mask,
    )

    block_bytes = tb * C * itemsize
    # 2 inputs x 2 buffers + lane-padded label buffers / per-row f32 temporaries
    # + headroom, clamped to the physical per-core VMEM of this generation.
    need = 4 * block_bytes + 8 * tb * 512 + (8 << 20)
    vmem_limit = min(vmem_cap, max(32 * 1024 * 1024, need))

    cost = pl.CostEstimate(
        flops=6 * B * C,
        transcendentals=B,
        bytes_accessed=2 * B * C * itemsize + B * 4 + num_splits * 4,
    )

    partials = pl.pallas_call(
        kernel,
        out_shape=jax.ShapeDtypeStruct((num_splits, 1, 1), jnp.float32),
        grid_spec=pltpu.PrefetchScalarGridSpec(
            num_scalar_prefetch=0,
            grid=(num_splits, steps_per_split),
            in_specs=[
                pl.BlockSpec((tb, C), feat_map),
                pl.BlockSpec((tb, C), feat_map),
                pl.BlockSpec((tb, 1), feat_map),
            ],
            # One resident (1,1) partial per split; written once per split.
            out_specs=pl.BlockSpec((1, 1, 1), lambda si, ji: (si, 0, 0)),
            scratch_shapes=[pltpu.VMEM((1, 1), jnp.float32)],
        ),
        compiler_params=pltpu.CompilerParams(
            dimension_semantics=("parallel", "arbitrary"),
            vmem_limit_bytes=int(vmem_limit),
        ),
        cost_estimate=cost,
    )(output1, output2, label2d)

    return jnp.sum(partials) * (1.0 / float(B))


def _reference_loss(output1, output2, label, margin=2.0):
    c = output1.shape[1]
    diff = output1.astype(jnp.float32) - output2.astype(jnp.float32) + _EPS
    dist = jnp.sqrt(jnp.sum(diff * diff, axis=1)) / c
    return jnp.mean(
        (1.0 - label) * dist**2 + label * jnp.clip(margin - dist, 0.0) ** 2
    )


if __name__ == "__main__":
    key = jax.random.PRNGKey(0)
    k1, k2, k3 = jax.random.split(key, 3)

    # Small demo shapes: batch=8, hidden=32.
    B, C = 8, 32
    output1 = jax.random.normal(k1, (B, C), dtype=jnp.float32)
    output2 = jax.random.normal(k2, (B, C), dtype=jnp.float32)
    label = jax.random.bernoulli(k3, 0.5, (B,)).astype(jnp.float32)

    loss = contrastive_loss(output1, output2, label, margin=2.0)
    jax.block_until_ready(loss)
    ref = _reference_loss(output1, output2, label, margin=2.0)
    assert jnp.allclose(loss, ref, rtol=1e-5, atol=1e-6), (loss, ref)

    # Multi-tile path: two splits, accumulation across steps, one padded tile.
    B2 = 24
    o1b = jax.random.normal(k1, (B2, C), dtype=jnp.float32)
    o2b = jax.random.normal(k2, (B2, C), dtype=jnp.float32)
    lb = jax.random.bernoulli(k3, 0.5, (B2,)).astype(jnp.float32)
    loss2 = contrastive_loss(o1b, o2b, lb, margin=2.0, block_b=8)
    jax.block_until_ready(loss2)
    ref2 = _reference_loss(o1b, o2b, lb, margin=2.0)
    assert jnp.allclose(loss2, ref2, rtol=1e-5, atol=1e-6), (loss2, ref2)

    # Partial final tile: B % tile != 0 exercises the runtime tail-row mask.
    B3 = 20
    o1c = jax.random.normal(k1, (B3, C), dtype=jnp.float32)
    o2c = jax.random.normal(k2, (B3, C), dtype=jnp.float32)
    lc = jax.random.bernoulli(k3, 0.5, (B3,)).astype(jnp.float32)
    loss3 = contrastive_loss(o1c, o2c, lc, margin=2.0, block_b=8)
    jax.block_until_ready(loss3)
    ref3 = _reference_loss(o1c, o2c, lc, margin=2.0)
    assert jnp.allclose(loss3, ref3, rtol=1e-5, atol=1e-6), (loss3, ref3)

    # Native-dtype path: bf16 inputs cast to f32 inside the kernel.
    loss4 = contrastive_loss(
        output1.astype(jnp.bfloat16), output2.astype(jnp.bfloat16), label, margin=2.0
    )
    jax.block_until_ready(loss4)
    ref4 = _reference_loss(
        output1.astype(jnp.bfloat16), output2.astype(jnp.bfloat16), label, margin=2.0
    )
    assert jnp.allclose(loss4, ref4, rtol=1e-2, atol=1e-3), (loss4, ref4)

    print("KERNEL_OK")
</pallas_src>

<mosaic_0001>
module attributes {stable_mosaic.version = 11 : i64} {
  func.func @_contrastive_loss_kernel(%arg0: i32, %arg1: i32, %arg2: memref<8x32xf32, #tpu.memory_space<vmem>>, %arg3: memref<8x32xf32, #tpu.memory_space<vmem>>, %arg4: memref<8x1xf32, #tpu.memory_space<vmem>>, %arg5: memref<1x1x1xf32, #tpu.memory_space<vmem>>, %arg6: memref<1x1xf32, #tpu.memory_space<vmem>>) attributes {dimension_semantics = [#tpu.dimension_semantics<parallel>, #tpu.dimension_semantics<arbitrary>], iteration_bounds = array<i64: 1, 1>, scalar_prefetch = 0 : i64, scratch_operands = 1 : i64, tpu.core_type = #tpu.core_type<tc>, window_params = [{transform_indices = @transform_0, window_bounds = array<i64: 8, 32>}, {transform_indices = @transform_1, window_bounds = array<i64: 8, 32>}, {transform_indices = @transform_2, window_bounds = array<i64: 8, 1>}, {transform_indices = @transform_3, window_bounds = array<i64: 1, 1, 1>}]} {
    %c0_i32 = arith.constant 0 : i32
    %0 = arith.cmpi eq, %arg1, %c0_i32 : i32
    %1 = arith.extui %0 : i1 to i32
    %c0_i32_0 = arith.constant 0 : i32
    %2 = arith.cmpi ne, %1, %c0_i32_0 : i32
    scf.if %2 {
      %cst_19 = arith.constant 0.000000e+00 : f32
      %37 = vector.broadcast %cst_19 : f32 to vector<1x1xf32>
      %c0_20 = arith.constant 0 : index
      %c0_21 = arith.constant 0 : index
      %38 = vector.load %arg6[%c0_20, %c0_21] : memref<1x1xf32, #tpu.memory_space<vmem>>, vector<1x1xf32>
      tpu.vector_store %arg6[%c0_20, %c0_21], %37 {strides = array<i32>} : memref<1x1xf32, #tpu.memory_space<vmem>>, vector<1x1xf32>,
    } else {
    }
    %c0 = arith.constant 0 : index
    %c0_1 = arith.constant 0 : index
    %3 = vector.load %arg2[%c0, %c0_1] : memref<8x32xf32, #tpu.memory_space<vmem>>, vector<8x32xf32>
    %c0_2 = arith.constant 0 : index
    %c0_3 = arith.constant 0 : index
    %4 = vector.load %arg3[%c0_2, %c0_3] : memref<8x32xf32, #tpu.memory_space<vmem>>, vector<8x32xf32>
    %5 = arith.subf %3, %4 : vector<8x32xf32>
    %cst = arith.constant 9.99999997E-7 : f32
    %6 = vector.broadcast %cst : f32 to vector<8x32xf32>
    %7 = arith.addf %5, %6 : vector<8x32xf32>
    %cst_4 = arith.constant 1.000000e+00 : f32
    %8 = vector.broadcast %cst_4 : f32 to vector<32x1xf32>
    %9 = arith.mulf %7, %7 : vector<8x32xf32>
    %cst_5 = arith.constant dense<0.000000e+00> : vector<8x1xf32>
    %10 = tpu.matmul %9, %8, %cst_5 {dimension_numbers = #tpu.dot_dimension_numbers<[1], [0], [0], [1], [0, 0, 1, 1], [], []>} : vector<8x32xf32>, vector<32x1xf32>, vector<8x1xf32> -> vector<8x1xf32>
    %11 = math.sqrt %10 : vector<8x1xf32>
    %cst_6 = arith.constant 3.125000e-02 : f32
    %12 = vector.broadcast %cst_6 : f32 to vector<8x1xf32>
    %13 = arith.mulf %11, %12 : vector<8x1xf32>
    %c0_7 = arith.constant 0 : index
    %c0_8 = arith.constant 0 : index
    %14 = vector.load %arg4[%c0_7, %c0_8] : memref<8x1xf32, #tpu.memory_space<vmem>>, vector<8x1xf32>
    %cst_9 = arith.constant 2.000000e+00 : f32
    %15 = vector.broadcast %cst_9 : f32 to vector<8x1xf32>
    %16 = arith.subf %15, %13 : vector<8x1xf32>
    %cst_10 = arith.constant 0.000000e+00 : f32
    %17 = vector.broadcast %cst_10 : f32 to vector<8x1xf32>
    %18 = arith.maximumf %16, %17 : vector<8x1xf32>
    %cst_11 = arith.constant 1.000000e+00 : f32
    %19 = vector.broadcast %cst_11 : f32 to vector<8x1xf32>
    %20 = arith.subf %19, %14 : vector<8x1xf32>
    %21 = arith.mulf %13, %13 : vector<8x1xf32>
    %22 = arith.mulf %20, %21 : vector<8x1xf32>
    %23 = arith.mulf %18, %18 : vector<8x1xf32>
    %24 = arith.mulf %14, %23 : vector<8x1xf32>
    %25 = arith.addf %22, %24 : vector<8x1xf32>
    %c0_12 = arith.constant 0 : index
    %c0_13 = arith.constant 0 : index
    %26 = vector.load %arg6[%c0_12, %c0_13] : memref<1x1xf32, #tpu.memory_space<vmem>>, vector<1x1xf32>
    %27 = vector.shape_cast %25 : vector<8x1xf32> to vector<1x8x1xf32>
    %cst_14 = arith.constant dense<0.000000e+00> : vector<1xf32>
    %28 = vector.multi_reduction <add>, %27, %cst_14 [1, 2] : vector<1x8x1xf32> to vector<1xf32>
    %29 = vector.shape_cast %28 : vector<1xf32> to vector<1x1x1xf32>
    %30 = vector.extract %29[0, 0, 0] : f32 from vector<1x1x1xf32>
    %31 = vector.broadcast %30 : f32 to vector<1x1xf32>
    %32 = arith.addf %26, %31 : vector<1x1xf32>
    %c0_15 = arith.constant 0 : index
    %c0_16 = arith.constant 0 : index
    %33 = vector.load %arg6[%c0_15, %c0_16] : memref<1x1xf32, #tpu.memory_space<vmem>>, vector<1x1xf32>
    tpu.vector_store %arg6[%c0_15, %c0_16], %32 {strides = array<i32>} : memref<1x1xf32, #tpu.memory_space<vmem>>, vector<1x1xf32>,
    %c0_i32_17 = arith.constant 0 : i32
    %34 = arith.cmpi eq, %arg1, %c0_i32_17 : i32
    %35 = arith.extui %34 : i1 to i32
    %c0_i32_18 = arith.constant 0 : i32
    %36 = arith.cmpi ne, %35, %c0_i32_18 : i32
    scf.if %36 {
      %c0_19 = arith.constant 0 : index
      %c0_20 = arith.constant 0 : index
      %37 = vector.load %arg6[%c0_19, %c0_20] : memref<1x1xf32, #tpu.memory_space<vmem>>, vector<1x1xf32>
      %c0_21 = arith.constant 0 : index
      %c0_22 = arith.constant 0 : index
      %c0_23 = arith.constant 0 : index
      %38 = vector.load %arg5[%c0_21, %c0_22, %c0_23] : memref<1x1x1xf32, #tpu.memory_space<vmem>>, vector<1x1x1xf32>
      %39 = vector.shape_cast %38 : vector<1x1x1xf32> to vector<1x1xf32>
      %40 = vector.shape_cast %37 : vector<1x1xf32> to vector<1x1x1xf32>
      tpu.vector_store %arg5[%c0_21, %c0_22, %c0_23], %40 {strides = array<i32>} : memref<1x1x1xf32, #tpu.memory_space<vmem>>, vector<1x1x1xf32>,
    } else {
    }
    return
  }
  func.func @transform_0(%arg0: i32, %arg1: i32) -> (i32, i32) {
    %c1_i32 = arith.constant 1 : i32
    %0 = arith.muli %arg0, %c1_i32 : i32
    %1 = arith.addi %0, %arg1 : i32
    %c0_i32 = arith.constant 0 : i32
    %2 = arith.minsi %1, %c0_i32 : i32
    %c0_i32_0 = arith.constant 0 : i32
    %c0_i32_1 = arith.constant 0 : i32
    return %2, %c0_i32_0 : i32, i32
  }
  func.func @transform_1(%arg0: i32, %arg1: i32) -> (i32, i32) {
    %c1_i32 = arith.constant 1 : i32
    %0 = arith.muli %arg0, %c1_i32 : i32
    %1 = arith.addi %0, %arg1 : i32
    %c0_i32 = arith.constant 0 : i32
    %2 = arith.minsi %1, %c0_i32 : i32
    %c0_i32_0 = arith.constant 0 : i32
    %c0_i32_1 = arith.constant 0 : i32
    return %2, %c0_i32_0 : i32, i32
  }
  func.func @transform_2(%arg0: i32, %arg1: i32) -> (i32, i32) {
    %c1_i32 = arith.constant 1 : i32
    %0 = arith.muli %arg0, %c1_i32 : i32
    %1 = arith.addi %0, %arg1 : i32
    %c0_i32 = arith.constant 0 : i32
    %2 = arith.minsi %1, %c0_i32 : i32
    %c0_i32_0 = arith.constant 0 : i32
    %c0_i32_1 = arith.constant 0 : i32
    return %2, %c0_i32_0 : i32, i32
  }
  func.func @transform_3(%arg0: i32, %arg1: i32) -> (i32, i32, i32) {
    %c0_i32 = arith.constant 0 : i32
    %c0_i32_0 = arith.constant 0 : i32
    %c0_i32_1 = arith.constant 0 : i32
    return %arg0, %c0_i32, %c0_i32_0 : i32, i32, i32
  }
}

</mosaic_0001>

<bundles_post_ra>
// kernel: tpu_custom_call.1
= control target key start
LH: loop header
LB: loop body
LE: loop exit
PB: predicated region body
PF: predicated region fallthrough
CT: control target
= control target key end

     0   :  { %8 = vsyncpa [#allocation4], 0  ;;  %s379_s0 = inlined_call_operand.vmem [shape: f32[8,32], index: 0, kind: input, shape index: {}]   ;;  %s380_s1 = inlined_call_operand.hbm [shape: f32[8,32], index: 1, kind: input, shape index: {}]   ;;  %s381_s2 = inlined_call_operand.vmem [shape: f32[8,1], index: 2, kind: input, shape index: {}]   ;;  %s382_s3 = inlined_call_operand.hbm [shape: f32[1,1,1], index: 3, kind: output, shape index: {}]  }
   0x1   :  { %9 = vsyncpa [#allocation5], 0  ;;  %s320_s12 = smov [#allocation3]   ;;  %s272_s16 = scalar_lea.hbm %s380_s1, 128 }
   0x2   :  { %s33_s13 = sshll.u32 %s320_s12, 4  ;;  %p273_p0 = scmp.ne.s32.totalorder %s380_s1, %s272_s16  ;;  %s34_s13 = int_to_ptr.vmem [resolvable:$true] %s33_s13 }
   0x3   :  { %p276_p1 = scmp.lt.u32.totalorder %s272_s16, %s380_s1 }
   0x5   :  { %p278_p2 = pnand %p276_p1, %p273_p0 }
   0x7   :  { %281 = shalt.err (!%p278_p2)
}
   0x8   :  { %s282_s21 = scalar_lea.vmem %s34_s13, 128  ;;  %p287_p4 = scmp.lt.s32.totalorder %s34_s13, %s34_s13 }
   0x9   :  { %p283_p3 = scmp.ne.s32.totalorder %s34_s13, %s282_s21  ;;  %p288_p5 = scmp.lt.s32.totalorder %s282_s21, %s282_s21 }
   0xb   :  { %p289_p6 = por %p288_p5, %p287_p4 }
   0xd   :  { %p290_p7 = pnand %p289_p6, %p283_p3 }
   0xf   :  { %293 = shalt.err (!%p290_p7)
}
  0x10   :  { %36 = dma.hbm_to_vmem [thread:$0]  %s380_s1, 128, %s34_s13, [#allocation4]  }
  0x11   :  { %316 = dma.done.wait [#allocation4], 128  }
  0x12   :  { %317 = vsyncadd [#allocation4], 4294967168  ;;  %vm93_vm0 = vcmask 0   ;;  %v321_v0 = vmov 0.0|0.0   ;;  %v322_v1 = vmov 1.0|1.0  }
  0x13   :  { %258 = vmatprep.subr.bf16.mxu0 %v321_v0  ;;  %v323_v2 = vmov 0.0   ;;  %vm324_vm1 = vmmov 0   ;;  %v95_v3 = vld [vmem:[%s379_s0] sm:$0xff]  ;;  %vm100_vm2 = vcmask 261120   ;;  %vm192_vm5 = vcmask 7168  }
  0x14   :  { %259 = vmatpush3.bf16.msra.mxu0 %v322_v1  ;;  %94 = vst.msk [vmem:[#allocation2] sm:$0x1] %vm93_vm0, %v323_v2  ;;  %255 = vmatprep.mubr.msk.f32.mxu0 %vm324_vm1, %v323_v2  ;;  %v96_v4 = vld [vmem:[#allocation3] sm:$0xff] }
  0x15   :  { %260 = vmatprep.subr.bf16.mxu0 %v321_v0  ;;  %v97_v5 = vsub.f32 %v95_v3, %v96_v4  ;;  %v182_v16 = vld [vmem:[%s381_s2] sm:$0xff]  ;;  %s325_s2 = smov [#allocation6]  }
  0x16   :  { %v185_v19 = vsub.f32 1.0, %v182_v16  ;;  %s218_s27 = sshll.u32 %s325_s2, 4  ;;  %s219_s27 = int_to_ptr.vmem [resolvable:$true] %s218_s27 }
  0x17   :  { %v98_v6 = vadd.f32 1e-06, %v97_v5  ;;  %s294_s28 = scalar_lea.vmem %s219_s27, 16  ;;  %s298_s29 = scalar_lea.vmem %s219_s27, 32 }
  0x18   :  { %261 = vmatpush3.bf16.msra.mxu0 %v322_v1  ;;  %p295_p8 = scmp.ne.s32.totalorder %s219_s27, %s294_s28  ;;  %p299_p9 = scmp.lt.s32.totalorder %s219_s27, %s219_s27 }
  0x19   :  { %v99_v7 = vmul.f32 %v98_v6, %v98_v6  ;;  %p300_p10 = scmp.lt.s32.totalorder %s298_s29, %s294_s28 }
  0x1b   :  { %256 = vmatmul.mubr.msk.f32.vlgmr.msra.gmra.mrb[0].mxu0 %vm100_vm2, %v99_v7  ;;  %v191_v33 = vld [vmem:[#allocation2] sm:$0x1]  ;;  %p301_p11 = por %p300_p10, %p299_p9 }
  0x1d   :  { %p302_p12 = pnand %p301_p11, %p295_p8 }
  0xee   :  { %v170_v8 = vpop.f32.mrb[0].mxu0 }
  0xef   :  { %270 = vrsqrt.f32 %v170_v8  ;;  %v257_v9 = vpop.f32.mrb[1].mxu0  ;;  %vm176_vm3 = vcmp.eq.f32.partialorder %v170_v8, inf  ;;  %v179_v12 = vand.u32 2147483648, %v170_v8  ;;  %vm178_vm4 = vcmp.eq.f32.partialorder %v170_v8, 0.0 }
  0xf9   :  { %v271_v10 = vpop.eup %270 }
  0xfa   :  { %v175_v11 = vmul.f32 %v271_v10, %v170_v8 }
  0xfc   :  { %v177_v13 = vsel %vm176_vm3, %v170_v8, %v175_v11 }
  0xfd   :  { %v180_v14 = vsel %vm178_vm4, %v179_v12, %v177_v13 }
  0xfe   :  { %v181_v15 = vmul.f32 0.03125, %v180_v14 }
 0x100   :  { %v183_v17 = vsub.f32 2.0, %v181_v15  ;;  %v186_v20 = vmul.f32 %v181_v15, %v181_v15 }
 0x102   :  { %v184_v18 = vmax.f32 %v183_v17, 0.0  ;;  %v187_v22 = vmul.f32 %v186_v20, %v185_v19 }
 0x104   :  { %v188_v21 = vmul.f32 %v184_v18, %v184_v18 }
 0x106   :  { %v189_v23 = vmul.f32 %v188_v21, %v182_v16 }
 0x108   :  { %v190_v24 = vadd.f32 %v189_v23, %v187_v22 }
 0x10a   :  { %v193_v25 = vsel %vm192_vm5, %v190_v24, 0.0 }
 0x10b   :  { %194 = vadd.xlane.f32.xlu0 %v193_v25 }
 0x198   :  { %v195_v26 = vpop.xlane.xlu0 %194 }
 0x199   :  { %v196_v27 = vrot.slane %v195_v26, 4 }
 0x19b   :  { %v197_v28 = vadd.f32 %v196_v27, %v195_v26 }
 0x19d   :  { %v198_v29 = vrot.slane %v197_v28, 2 }
 0x19f   :  { %v199_v30 = vadd.f32 %v198_v29, %v197_v28 }
 0x1a1   :  { %v200_v31 = vrot.slane %v199_v30, 1 }
 0x1a3   :  { %v201_v32 = vadd.f32 %v200_v31, %v199_v30 }
 0x1a5   :  { %262 = vpush %v201_v32 }
 0x1d6   :  { %s263_s0 = spop %262 }
 0x1d7   :  { %v203_v34 = vstv %s263_s0 }
 0x1d8   :  { %v204_v35 = vadd.f32 %v203_v34, %v191_v33 }
 0x1da   :  { %206 = vst.msk [vmem:[#allocation2] sm:$0x1] %vm93_vm0, %v204_v35 }
 0x1e1   :  { %v210_v36 = vld [vmem:[#allocation2] sm:$0x1] }
 0x1e2   :  { %211 = vst.msk [vmem:[#allocation6] sm:$0x1] %vm93_vm0, %v210_v36 }
 0x1e3   :  { %305 = shalt.err (!%p302_p12)
}
 0x1e4   :  { %s306_s5 = scalar_lea.hbm %s382_s3, 16 }
 0x1e5   :  { %p307_p13 = scmp.ne.s32.totalorder %s382_s3, %s306_s5  ;;  %p310_p0 = scmp.lt.u32.totalorder %s306_s5, %s382_s3 }
 0x1e7   :  { %p312_p1 = pnand %p310_p0, %p307_p13 }
 0x1e9   :  { %315 = shalt.err (!%p312_p1)
}
 0x1ea   :  { %221 = dma.vmem_to_hbm [thread:$0]  %s219_s27, 16, %s382_s3, [#allocation5]  }
 0x1eb   :  { %318 = dma.done.wait [#allocation5], 16  }
 0x1ec   :  { %319 = vsyncadd [#allocation5], 4294967280 }
 0x1ed   :  { %225 = vsyncpa [#allocation4], 1 }
 0x1ee   :  { %226 = vsyncpa [#allocation5], 1 }

</bundles_post_ra>
